<compile_context>
chip_gen: v6e
topology: v6e:2x2x1
jax: 0.10.0
libtpu: 0.0.40
codegen_flags: <defaults>
</compile_context>

<pallas_src>
import functools

import jax
import jax.numpy as jnp
from jax import lax
from jax.experimental import pallas as pl
from jax.experimental.pallas import tpu as pltpu


LN_EPS = 1e-5       # PyTorch nn.LayerNorm default eps
Q_LANES = 128       # lane-dense output slab width


def _layernorm(x, gamma, beta):
    # PyTorch LayerNorm: biased variance over the last dim, affine scale/shift.
    mu = jnp.mean(x, axis=-1, keepdims=True)
    xc = x - mu
    var = jnp.mean(xc * xc, axis=-1, keepdims=True)
    return xc * lax.rsqrt(var + LN_EPS) * gamma + beta


def critic_kernel(state_ref, action_ref, w1_ref, wf_ref, pp_ref, q_ref,
                  *, fc1, fc2):
    state = state_ref[...]          # (TB, input_dims) f32
    action = action_ref[...]        # (TB, n_actions)  f32
    pp = pp_ref[...]                # (9, P) packed per-feature params

    b1 = pp[0:1, :fc1]
    g1 = pp[1:2, :fc1]
    be1 = pp[2:3, :fc1]
    b2 = pp[3:4, :fc2]
    g2 = pp[4:5, :fc2]
    be2 = pp[5:6, :fc2]
    ba = pp[6:7, :fc2]
    wq = pp[7:8, :fc2]              # q-head weight as a row vector
    bq = pp[8:9, 0:1]               # q-head bias, (1, 1)

    # fc1 -> LayerNorm -> relu
    h1 = jnp.dot(state, w1_ref[...], preferred_element_type=jnp.float32) + b1
    h1 = _layernorm(h1, g1, be1)
    h1 = jnp.maximum(h1, 0.0)

    # Fused second stage: one MXU pass with a block-diagonal weight.
    #   [h1 | action] @ [[w2, 0], [0, wa]]  ->  [fc2(h1) | action_value(action)]
    x = jnp.concatenate([h1, action], axis=-1)                    # (TB, fc1+na)
    fused = jnp.dot(x, wf_ref[...],
                    preferred_element_type=jnp.float32)           # (TB, 2*fc2)

    sv = _layernorm(fused[:, :fc2] + b2, g2, be2)                 # no relu here
    av = jnp.maximum(fused[:, fc2:] + ba, 0.0)

    # Combine and final Q head: VPU multiply + lane reduce (no N=1 matmul).
    sav = jnp.maximum(sv + av, 0.0)
    q = jnp.sum(sav * wq, axis=-1, keepdims=True) + bq            # (TB, 1)

    # Lane-dense store: broadcast q across 128 lanes; wrapper slices lane 0.
    q_ref[...] = jnp.broadcast_to(q, q_ref.shape).astype(q_ref.dtype)


def _pick_tile_b(B):
    for t in (1024, 512, 256):
        if B % t == 0:
            return t
    return B  # whole batch in a single block (small-B / odd-B case)


def critic_forward(state, action, kparams, *, tile_b=None):
    """Runs the whole Critic forward inside one pallas_call.

    kparams comes from pack_critic_params(): {"w1", "w_fused", "packed"}.
    """
    B, input_dims = state.shape
    n_actions = action.shape[1]
    fc1 = kparams["w1"].shape[1]
    fc2 = kparams["w_fused"].shape[1] // 2

    if tile_b is None:
        tile_b = _pick_tile_b(B)
    assert B % tile_b == 0
    grid = (B // tile_b,)

    kernel = functools.partial(critic_kernel, fc1=fc1, fc2=fc2)

    def replicated(shape):
        return pl.BlockSpec(shape, lambda i: (0, 0))

    out = pl.pallas_call(
        kernel,
        out_shape=jax.ShapeDtypeStruct((B, Q_LANES), jnp.float32),
        grid=grid,
        in_specs=[
            pl.BlockSpec((tile_b, input_dims), lambda i: (i, 0)),   # state
            pl.BlockSpec((tile_b, n_actions), lambda i: (i, 0)),    # action
            replicated(kparams["w1"].shape),                        # w1
            replicated(kparams["w_fused"].shape),                   # fused w2/wa
            replicated(kparams["packed"].shape),                    # packed vecs
        ],
        out_specs=pl.BlockSpec((tile_b, Q_LANES), lambda i: (i, 0)),
        compiler_params=pltpu.CompilerParams(
            dimension_semantics=("parallel",)),
    )(state, action, kparams["w1"], kparams["w_fused"], kparams["packed"])

    return out[:, :1]   # (B, 1)


def init_critic_params(key, input_dims, fc1_dims, fc2_dims, n_actions):
    """Deterministic parameter init mirroring the PyTorch __init__ ranges.

    Weights are stored transposed: (in_features, out_features).
    """
    ks = jax.random.split(key, 8)
    f1 = 1.0 / jnp.sqrt(fc1_dims)   # torch: 1/sqrt(fc1.weight.size()[0])
    f2 = 1.0 / jnp.sqrt(fc2_dims)
    f3 = 0.003
    fa = 1.0 / jnp.sqrt(n_actions)  # PyTorch default Linear init bound

    u = lambda k, shape, b: jax.random.uniform(k, shape, jnp.float32, -b, b)

    return {
        "w1": u(ks[0], (input_dims, fc1_dims), f1),
        "b1": u(ks[1], (1, fc1_dims), f1),
        "ln1_g": jnp.ones((1, fc1_dims), jnp.float32),
        "ln1_b": jnp.zeros((1, fc1_dims), jnp.float32),
        "w2": u(ks[2], (fc1_dims, fc2_dims), f2),
        "b2": u(ks[3], (1, fc2_dims), f2),
        "ln2_g": jnp.ones((1, fc2_dims), jnp.float32),
        "ln2_b": jnp.zeros((1, fc2_dims), jnp.float32),
        "wa": u(ks[4], (n_actions, fc2_dims), fa),
        "ba": u(ks[5], (1, fc2_dims), fa),
        "wq": u(ks[6], (fc2_dims, 1), f3),
        "bq": u(ks[7], (1, 1), f3),
    }


def pack_critic_params(p):
    """One-time packing of the raw params into the kernel's 3-tensor layout."""
    fc1 = p["w1"].shape[1]
    fc2 = p["w2"].shape[1]
    n_actions = p["wa"].shape[0]
    P = max(fc1, fc2)

    def row(v, n):
        return jnp.pad(v.reshape(-1).astype(jnp.float32), (0, P - n))

    packed = jnp.stack([
        row(p["b1"], fc1), row(p["ln1_g"], fc1), row(p["ln1_b"], fc1),
        row(p["b2"], fc2), row(p["ln2_g"], fc2), row(p["ln2_b"], fc2),
        row(p["ba"], fc2), row(p["wq"], fc2), row(p["bq"], 1),
    ])                                                   # (9, P)

    # Block-diagonal fused weight: [h1 | action] @ w_fused = [fc2 out | av out]
    w_fused = jnp.zeros((fc1 + n_actions, 2 * fc2), jnp.float32)
    w_fused = w_fused.at[:fc1, :fc2].set(p["w2"])
    w_fused = w_fused.at[fc1:, fc2:].set(p["wa"])

    return {"w1": p["w1"].astype(jnp.float32),
            "w_fused": w_fused,
            "packed": packed}


def critic_reference(state, action, p):
    """Pure-JAX reference for correctness checking (uses raw params)."""
    def ln(x, g, b):
        mu = jnp.mean(x, axis=-1, keepdims=True)
        var = jnp.mean((x - mu) ** 2, axis=-1, keepdims=True)
        return (x - mu) / jnp.sqrt(var + LN_EPS) * g + b

    h1 = jax.nn.relu(ln(state @ p["w1"] + p["b1"], p["ln1_g"], p["ln1_b"]))
    sv = ln(h1 @ p["w2"] + p["b2"], p["ln2_g"], p["ln2_b"])
    av = jax.nn.relu(action @ p["wa"] + p["ba"])
    sav = jax.nn.relu(sv + av)
    return sav @ p["wq"] + p["bq"]


if __name__ == "__main__":
    # Small shapes consistent with a DDPG critic.
    B = 2
    input_dims = 32
    fc1_dims = 64
    fc2_dims = 64
    n_actions = 8

    key = jax.random.PRNGKey(0)
    k_state, k_action, k_params = jax.random.split(key, 3)

    state = jax.random.normal(k_state, (B, input_dims), jnp.float32)
    action = jax.random.normal(k_action, (B, n_actions), jnp.float32)
    raw_params = init_critic_params(k_params, input_dims, fc1_dims,
                                    fc2_dims, n_actions)
    kparams = pack_critic_params(raw_params)

    q = critic_forward(state, action, kparams)
    jax.block_until_ready(q)

    q_ref = critic_reference(state, action, raw_params)
    assert q.shape == (B, 1), q.shape
    assert jnp.allclose(q, q_ref, atol=1e-4, rtol=1e-4), (q, q_ref)

    print("KERNEL_OK")
</pallas_src>

<mosaic_0001>
module attributes {stable_mosaic.version = 11 : i64} {
  func.func @critic_kernel(%arg0: i32, %arg1: memref<2x32xf32, #tpu.memory_space<vmem>>, %arg2: memref<2x8xf32, #tpu.memory_space<vmem>>, %arg3: memref<32x64xf32, #tpu.memory_space<vmem>>, %arg4: memref<72x128xf32, #tpu.memory_space<vmem>>, %arg5: memref<9x64xf32, #tpu.memory_space<vmem>>, %arg6: memref<2x128xf32, #tpu.memory_space<vmem>>) attributes {dimension_semantics = [#tpu.dimension_semantics<parallel>], iteration_bounds = array<i64: 1>, scalar_prefetch = 0 : i64, scratch_operands = 0 : i64, tpu.core_type = #tpu.core_type<tc>, window_params = [{transform_indices = @transform_0, window_bounds = array<i64: 2, 32>}, {transform_indices = @transform_1, window_bounds = array<i64: 2, 8>}, {pipeline_mode = #tpu.pipeline_mode<synchronous>, transform_indices = @transform_2, window_bounds = array<i64: 32, 64>}, {pipeline_mode = #tpu.pipeline_mode<synchronous>, transform_indices = @transform_3, window_bounds = array<i64: 72, 128>}, {pipeline_mode = #tpu.pipeline_mode<synchronous>, transform_indices = @transform_4, window_bounds = array<i64: 9, 64>}, {transform_indices = @transform_5, window_bounds = array<i64: 2, 128>}]} {
    %c0 = arith.constant 0 : index
    %c0_0 = arith.constant 0 : index
    %0 = vector.load %arg1[%c0, %c0_0] : memref<2x32xf32, #tpu.memory_space<vmem>>, vector<2x32xf32>
    %c0_1 = arith.constant 0 : index
    %c0_2 = arith.constant 0 : index
    %1 = vector.load %arg2[%c0_1, %c0_2] : memref<2x8xf32, #tpu.memory_space<vmem>>, vector<2x8xf32>
    %c0_3 = arith.constant 0 : index
    %c0_4 = arith.constant 0 : index
    %2 = vector.load %arg5[%c0_3, %c0_4] : memref<9x64xf32, #tpu.memory_space<vmem>>, vector<9x64xf32>
    %3 = vector.extract_strided_slice %2 {offsets = [0, 0], sizes = [1, 64], strides = [1, 1]} : vector<9x64xf32> to vector<1x64xf32>
    %4 = vector.extract_strided_slice %2 {offsets = [1, 0], sizes = [1, 64], strides = [1, 1]} : vector<9x64xf32> to vector<1x64xf32>
    %5 = vector.extract_strided_slice %2 {offsets = [2, 0], sizes = [1, 64], strides = [1, 1]} : vector<9x64xf32> to vector<1x64xf32>
    %6 = vector.extract_strided_slice %2 {offsets = [3, 0], sizes = [1, 64], strides = [1, 1]} : vector<9x64xf32> to vector<1x64xf32>
    %7 = vector.extract_strided_slice %2 {offsets = [4, 0], sizes = [1, 64], strides = [1, 1]} : vector<9x64xf32> to vector<1x64xf32>
    %8 = vector.extract_strided_slice %2 {offsets = [5, 0], sizes = [1, 64], strides = [1, 1]} : vector<9x64xf32> to vector<1x64xf32>
    %9 = vector.extract_strided_slice %2 {offsets = [6, 0], sizes = [1, 64], strides = [1, 1]} : vector<9x64xf32> to vector<1x64xf32>
    %10 = vector.extract_strided_slice %2 {offsets = [7, 0], sizes = [1, 64], strides = [1, 1]} : vector<9x64xf32> to vector<1x64xf32>
    %11 = vector.extract_strided_slice %2 {offsets = [8, 0], sizes = [1, 1], strides = [1, 1]} : vector<9x64xf32> to vector<1x1xf32>
    %c0_5 = arith.constant 0 : index
    %c0_6 = arith.constant 0 : index
    %12 = vector.load %arg3[%c0_5, %c0_6] : memref<32x64xf32, #tpu.memory_space<vmem>>, vector<32x64xf32>
    %cst = arith.constant dense<0.000000e+00> : vector<2x64xf32>
    %13 = tpu.matmul %0, %12, %cst {dimension_numbers = #tpu.dot_dimension_numbers<[1], [0], [0], [1], [0, 0, 1, 1], [], []>} : vector<2x32xf32>, vector<32x64xf32>, vector<2x64xf32> -> vector<2x64xf32>
    %14 = vector.broadcast %3 : vector<1x64xf32> to vector<2x64xf32>
    %15 = arith.addf %13, %14 : vector<2x64xf32>
    %cst_7 = arith.constant dense<0.000000e+00> : vector<2xf32>
    %16 = vector.multi_reduction <add>, %15, %cst_7 [1] : vector<2x64xf32> to vector<2xf32>
    %17 = vector.shape_cast %16 : vector<2xf32> to vector<2x1xf32>
    %cst_8 = arith.constant 6.400000e+01 : f32
    %18 = vector.broadcast %cst_8 : f32 to vector<2x1xf32>
    %19 = arith.divf %17, %18 : vector<2x1xf32>
    %20 = vector.broadcast %19 : vector<2x1xf32> to vector<2x64xf32>
    %21 = arith.subf %15, %20 : vector<2x64xf32>
    %22 = arith.mulf %21, %21 : vector<2x64xf32>
    %cst_9 = arith.constant dense<0.000000e+00> : vector<2xf32>
    %23 = vector.multi_reduction <add>, %22, %cst_9 [1] : vector<2x64xf32> to vector<2xf32>
    %24 = vector.shape_cast %23 : vector<2xf32> to vector<2x1xf32>
    %cst_10 = arith.constant 6.400000e+01 : f32
    %25 = vector.broadcast %cst_10 : f32 to vector<2x1xf32>
    %26 = arith.divf %24, %25 : vector<2x1xf32>
    %cst_11 = arith.constant 9.99999974E-6 : f32
    %27 = vector.broadcast %cst_11 : f32 to vector<2x1xf32>
    %28 = arith.addf %26, %27 : vector<2x1xf32>
    %29 = math.rsqrt %28 : vector<2x1xf32>
    %30 = vector.broadcast %29 : vector<2x1xf32> to vector<2x64xf32>
    %31 = arith.mulf %21, %30 : vector<2x64xf32>
    %32 = vector.broadcast %4 : vector<1x64xf32> to vector<2x64xf32>
    %33 = arith.mulf %31, %32 : vector<2x64xf32>
    %34 = vector.broadcast %5 : vector<1x64xf32> to vector<2x64xf32>
    %35 = arith.addf %33, %34 : vector<2x64xf32>
    %cst_12 = arith.constant 0.000000e+00 : f32
    %36 = vector.broadcast %cst_12 : f32 to vector<2x64xf32>
    %37 = arith.maximumf %35, %36 : vector<2x64xf32>
    %38 = tpu.concatenate %37, %1 in 1 : vector<2x64xf32>, vector<2x8xf32> -> vector<2x72xf32>
    %c0_13 = arith.constant 0 : index
    %c0_14 = arith.constant 0 : index
    %39 = vector.load %arg4[%c0_13, %c0_14] : memref<72x128xf32, #tpu.memory_space<vmem>>, vector<72x128xf32>
    %cst_15 = arith.constant dense<0.000000e+00> : vector<2x128xf32>
    %40 = tpu.matmul %38, %39, %cst_15 {dimension_numbers = #tpu.dot_dimension_numbers<[1], [0], [0], [1], [0, 0, 1, 1], [], []>} : vector<2x72xf32>, vector<72x128xf32>, vector<2x128xf32> -> vector<2x128xf32>
    %41 = vector.extract_strided_slice %40 {offsets = [0, 0], sizes = [2, 64], strides = [1, 1]} : vector<2x128xf32> to vector<2x64xf32>
    %42 = vector.broadcast %6 : vector<1x64xf32> to vector<2x64xf32>
    %43 = arith.addf %41, %42 : vector<2x64xf32>
    %cst_16 = arith.constant dense<0.000000e+00> : vector<2xf32>
    %44 = vector.multi_reduction <add>, %43, %cst_16 [1] : vector<2x64xf32> to vector<2xf32>
    %45 = vector.shape_cast %44 : vector<2xf32> to vector<2x1xf32>
    %cst_17 = arith.constant 6.400000e+01 : f32
    %46 = vector.broadcast %cst_17 : f32 to vector<2x1xf32>
    %47 = arith.divf %45, %46 : vector<2x1xf32>
    %48 = vector.broadcast %47 : vector<2x1xf32> to vector<2x64xf32>
    %49 = arith.subf %43, %48 : vector<2x64xf32>
    %50 = arith.mulf %49, %49 : vector<2x64xf32>
    %cst_18 = arith.constant dense<0.000000e+00> : vector<2xf32>
    %51 = vector.multi_reduction <add>, %50, %cst_18 [1] : vector<2x64xf32> to vector<2xf32>
    %52 = vector.shape_cast %51 : vector<2xf32> to vector<2x1xf32>
    %cst_19 = arith.constant 6.400000e+01 : f32
    %53 = vector.broadcast %cst_19 : f32 to vector<2x1xf32>
    %54 = arith.divf %52, %53 : vector<2x1xf32>
    %cst_20 = arith.constant 9.99999974E-6 : f32
    %55 = vector.broadcast %cst_20 : f32 to vector<2x1xf32>
    %56 = arith.addf %54, %55 : vector<2x1xf32>
    %57 = math.rsqrt %56 : vector<2x1xf32>
    %58 = vector.broadcast %57 : vector<2x1xf32> to vector<2x64xf32>
    %59 = arith.mulf %49, %58 : vector<2x64xf32>
    %60 = vector.broadcast %7 : vector<1x64xf32> to vector<2x64xf32>
    %61 = arith.mulf %59, %60 : vector<2x64xf32>
    %62 = vector.broadcast %8 : vector<1x64xf32> to vector<2x64xf32>
    %63 = arith.addf %61, %62 : vector<2x64xf32>
    %64 = vector.extract_strided_slice %40 {offsets = [0, 64], sizes = [2, 64], strides = [1, 1]} : vector<2x128xf32> to vector<2x64xf32>
    %65 = vector.broadcast %9 : vector<1x64xf32> to vector<2x64xf32>
    %66 = arith.addf %64, %65 : vector<2x64xf32>
    %cst_21 = arith.constant 0.000000e+00 : f32
    %67 = vector.broadcast %cst_21 : f32 to vector<2x64xf32>
    %68 = arith.maximumf %66, %67 : vector<2x64xf32>
    %69 = arith.addf %63, %68 : vector<2x64xf32>
    %cst_22 = arith.constant 0.000000e+00 : f32
    %70 = vector.broadcast %cst_22 : f32 to vector<2x64xf32>
    %71 = arith.maximumf %69, %70 : vector<2x64xf32>
    %72 = vector.broadcast %10 : vector<1x64xf32> to vector<2x64xf32>
    %73 = arith.mulf %71, %72 : vector<2x64xf32>
    %cst_23 = arith.constant dense<0.000000e+00> : vector<2xf32>
    %74 = vector.multi_reduction <add>, %73, %cst_23 [1] : vector<2x64xf32> to vector<2xf32>
    %75 = vector.shape_cast %74 : vector<2xf32> to vector<2x1xf32>
    %76 = vector.broadcast %11 : vector<1x1xf32> to vector<2x1xf32>
    %77 = arith.addf %75, %76 : vector<2x1xf32>
    %78 = vector.shape_cast %77 : vector<2x1xf32> to vector<2x1xf32>
    %79 = vector.broadcast %78 : vector<2x1xf32> to vector<2x128xf32>
    %c0_24 = arith.constant 0 : index
    %c0_25 = arith.constant 0 : index
    %80 = vector.load %arg6[%c0_24, %c0_25] : memref<2x128xf32, #tpu.memory_space<vmem>>, vector<2x128xf32>
    tpu.vector_store %arg6[%c0_24, %c0_25], %79 {strides = array<i32>} : memref<2x128xf32, #tpu.memory_space<vmem>>, vector<2x128xf32>,
    return
  }
  func.func @transform_0(%arg0: i32) -> (i32, i32) {
    %c0_i32 = arith.constant 0 : i32
    %c0_i32_0 = arith.constant 0 : i32
    return %arg0, %c0_i32 : i32, i32
  }
  func.func @transform_1(%arg0: i32) -> (i32, i32) {
    %c0_i32 = arith.constant 0 : i32
    %c0_i32_0 = arith.constant 0 : i32
    return %arg0, %c0_i32 : i32, i32
  }
  func.func @transform_2(%arg0: i32) -> (i32, i32) {
    %c0_i32 = arith.constant 0 : i32
    %c0_i32_0 = arith.constant 0 : i32
    %c0_i32_1 = arith.constant 0 : i32
    return %c0_i32, %c0_i32_0 : i32, i32
  }
  func.func @transform_3(%arg0: i32) -> (i32, i32) {
    %c0_i32 = arith.constant 0 : i32
    %c0_i32_0 = arith.constant 0 : i32
    %c0_i32_1 = arith.constant 0 : i32
    return %c0_i32, %c0_i32_0 : i32, i32
  }
  func.func @transform_4(%arg0: i32) -> (i32, i32) {
    %c0_i32 = arith.constant 0 : i32
    %c0_i32_0 = arith.constant 0 : i32
    %c0_i32_1 = arith.constant 0 : i32
    return %c0_i32, %c0_i32_0 : i32, i32
  }
  func.func @transform_5(%arg0: i32) -> (i32, i32) {
    %c0_i32 = arith.constant 0 : i32
    %c0_i32_0 = arith.constant 0 : i32
    return %arg0, %c0_i32 : i32, i32
  }
}

</mosaic_0001>

<bundles_post_ra>
// kernel: tpu_custom_call.1
= control target key start
LH: loop header
LB: loop body
LE: loop exit
PB: predicated region body
PF: predicated region fallthrough
CT: control target
= control target key end

     0   :  { %10 = vsyncpa [#allocation3], 0  ;;  %s658_s0 = inlined_call_operand.hbm [shape: f32[2,32], index: 0, kind: input, shape index: {}]   ;;  %s659_s1 = inlined_call_operand.hbm [shape: f32[2,8], index: 1, kind: input, shape index: {}]   ;;  %s660_s2 = inlined_call_operand.hbm [shape: f32[32,64], index: 2, kind: input, shape index: {}]   ;;  %s661_s3 = inlined_call_operand.hbm [shape: f32[72,128], index: 3, kind: input, shape index: {}]   ;;  %s662_s4 = inlined_call_operand.hbm [shape: f32[9,64], index: 4, kind: input, shape index: {}]   ;;  %s663_s5 = inlined_call_operand.hbm [shape: f32[2,128], index: 5, kind: output, shape index: {}]  }
   0x1   :  { %11 = vsyncpa [#allocation6], 0 }
   0x2   :  { %12 = vsyncpa [#allocation9], 0 }
   0x3   :  { %13 = vsyncpa [#allocation4], 0  ;;  %s561_s18 = smov [#allocation5]  }
   0x4   :  { %s30_s19 = sshll.u32 %s561_s18, 4  ;;  %s31_s19 = int_to_ptr.vmem [resolvable:$true] %s30_s19 }
   0x5   :  { %s441_s20 = scalar_lea.vmem %s31_s19, 32  ;;  %p446_p1 = scmp.lt.s32.totalorder %s31_s19, %s31_s19 }
   0x6   :  { %p442_p0 = scmp.ne.s32.totalorder %s31_s19, %s441_s20  ;;  %p447_p2 = scmp.lt.s32.totalorder %s441_s20, %s441_s20 }
   0x8   :  { %p448_p3 = por %p447_p2, %p446_p1 }
   0xa   :  { %p449_p4 = pnand %p448_p3, %p442_p0 }
   0xc   :  { %452 = shalt.err (!%p449_p4)
}
   0xd   :  { %33 = dma.hbm_to_vmem [thread:$0]  %s659_s1, 32, %s31_s19, [#allocation6]  }
   0xe   :  { %s562_s23 = smov [#allocation8]   ;;  %s563_s25 = smov [#allocation2]  }
   0xf   :  { %s51_s24 = sshll.u32 %s562_s23, 4  ;;  %s20_s26 = sshll.u32 %s563_s25, 4  ;;  %s52_s24 = int_to_ptr.vmem [resolvable:$true] %s51_s24  ;;  %s21_s26 = int_to_ptr.vmem [resolvable:$true] %s20_s26 }
  0x10   :  { %s461_s27 = scalar_lea.vmem %s52_s24, 1152  ;;  %p466_p6 = scmp.lt.s32.totalorder %s52_s24, %s52_s24 }
  0x11   :  { %p462_p5 = scmp.ne.s32.totalorder %s52_s24, %s461_s27  ;;  %p467_p7 = scmp.lt.s32.totalorder %s461_s27, %s461_s27 }
  0x13   :  { %p468_p8 = por %p467_p7, %p466_p6 }
  0x15   :  { %p469_p9 = pnand %p468_p8, %p462_p5 }
  0x17   :  { %472 = shalt.err (!%p469_p9)
}
  0x18   :  { %s564_s28 = smov 128   ;;  %s565_s29 = smov 8  }
  0x19   :  { %57 = dma.hbm_to_vmem [thread:$0]  %s661_s3, 1152, %s52_s24, [#allocation9], %s564_s28, %s564_s28, %s565_s29  }
  0x1a   :  { %s481_s1 = scalar_lea.vmem %s21_s26, 32  ;;  %p486_p11 = scmp.lt.s32.totalorder %s21_s26, %s21_s26 }
  0x1b   :  { %p482_p10 = scmp.ne.s32.totalorder %s21_s26, %s481_s1  ;;  %p487_p12 = scmp.lt.s32.totalorder %s481_s1, %s481_s1 }
  0x1d   :  { %p488_p13 = por %p487_p12, %p486_p11 }
  0x1f   :  { %p489_p0 = pnand %p488_p13, %p482_p10 }
  0x21   :  { %492 = shalt.err (!%p489_p0)
}
  0x22   :  { %23 = dma.hbm_to_vmem [thread:$0]  %s658_s0, 32, %s21_s26, [#allocation3]  }
  0x23   :  { %s566_s9 = smov [#allocation7]   ;;  %s567_s11 = smov [#allocation10]  }
  0x24   :  { %s39_s10 = sshll.u32 %s566_s9, 4  ;;  %s63_s12 = sshll.u32 %s567_s11, 4  ;;  %s40_s10 = int_to_ptr.vmem [resolvable:$true] %s39_s10  ;;  %s64_s12 = int_to_ptr.vmem [resolvable:$true] %s63_s12 }
  0x25   :  { %s501_s13 = scalar_lea.vmem %s40_s10, 512  ;;  %p506_p2 = scmp.lt.s32.totalorder %s40_s10, %s40_s10 }
  0x26   :  { %p502_p1 = scmp.ne.s32.totalorder %s40_s10, %s501_s13  ;;  %p507_p3 = scmp.lt.s32.totalorder %s501_s13, %s501_s13 }
  0x28   :  { %p508_p4 = por %p507_p3, %p506_p2 }
  0x2a   :  { %p509_p5 = pnand %p508_p4, %p502_p1 }
  0x2c   :  { %512 = shalt.err (!%p509_p5)
}
  0x2d   :  { %45 = dma.hbm_to_vmem [thread:$0]  %s660_s2, 512, %s40_s10, [#allocation6], %s564_s28, %s564_s28, %s565_s29  }
  0x2e   :  { %s521_s0 = scalar_lea.vmem %s64_s12, 256  ;;  %p526_p7 = scmp.lt.s32.totalorder %s64_s12, %s64_s12 }
  0x2f   :  { %p522_p6 = scmp.ne.s32.totalorder %s64_s12, %s521_s0  ;;  %p527_p8 = scmp.lt.s32.totalorder %s521_s0, %s521_s0 }
  0x31   :  { %p528_p9 = por %p527_p8, %p526_p7 }
  0x33   :  { %p529_p10 = pnand %p528_p9, %p522_p6 }
  0x35   :  { %532 = shalt.err (!%p529_p10)
}
  0x36   :  { %69 = dma.hbm_to_vmem [thread:$0]  %s662_s4, 256, %s64_s12, [#allocation9], %s564_s28, %s564_s28, %s565_s29  }
  0x37   :  { %553 = dma.done.wait [#allocation3], 32  }
  0x38   :  { %554 = vsyncadd [#allocation3], 4294967264 }
  0x39   :  { %555 = dma.done.wait [#allocation6], 544  }
  0x3a   :  { %556 = vsyncadd [#allocation6], 4294966752 }
  0x3b   :  { %557 = dma.done.wait [#allocation9], 1408  }
  0x3c   :  { %558 = vsyncadd [#allocation9], 4294965888  ;;  %v568_v0 = vmov 0.0   ;;  %vm569_vm0 = vmmov 0   ;;  %v92_v1 = vld [vmem:[#allocation7 + $0x18] sm:$0xff]  ;;  %v91_v2 = vld [vmem:[#allocation7 + $0x10] sm:$0xff]  ;;  %v93_v6 = vlaneseq }
  0x3d   :  { %384 = vmatprep.subr.mxu0 %v568_v0  ;;  %392 = vmatprep.mubr.msk.f32.mxu0 %vm569_vm0, %v568_v0  ;;  %v90_v3 = vld [vmem:[#allocation7 + $0x8] sm:$0xff]  ;;  %v89_v4 = vld [vmem:[#allocation7] sm:$0xff]  ;;  %v85_v5 = vld [vmem:[#allocation2] sm:$0x3]  ;;  %vm97_vm1 = vcmask 261120   ;;  %vm171_vm2 = vcmask 517120  }
  0x3e   :  { %395 = vmatprep.subr.mxu1 %v568_v0  ;;  %413 = vmatprep.mubr.msk.f32.mxu1 %vm569_vm0, %v568_v0  ;;  %v627_v7 = vshrl.u32 %v93_v6, 7  ;;  %v630_v9 = vld [vmem:[#allocation10] sm:$0xff]  ;;  %v86_v15 = vld [vmem:[#allocation5] sm:$0x3]  ;;  %s570_s2 = smov 64   ;;  %v211_v21 = vld [vmem:[#allocation8 + $0x40] sm:$0xff] }
  0x3f   :  { %385 = vmatpush3.msra.mxu0 %v92_v1  ;;  %198 = vrot.lane.b32.xlu1 %v86_v15, %s570_s2  ;;  %v210_v22 = vld [vmem:[#allocation8 + $0x38] sm:$0xff]  ;;  %v209_v23 = vld [vmem:[#allocation8 + $0x30] sm:$0xff]  ;;  %v208_v24 = vld [vmem:[#allocation8 + $0x28] sm:$0xff]  ;;  %vm201_vm3 = vcmask 523264   ;;  %vm212_vm4 = vcmask 588800   ;;  %s572_s4 = smov [#allocation11]  }
  0x40   :  { %386 = vmatprep.subr.mxu0 %v568_v0  ;;  %v95_v8 = vsub.s32 0, %v627_v7  ;;  %396 = vmatpush3.msra.mxu1 %v211_v21  ;;  %v207_v25 = vld [vmem:[#allocation8 + $0x20] sm:$0xff]  ;;  %v206_v26 = vld [vmem:[#allocation8 + $0x18] sm:$0xff]  ;;  %v205_v27 = vld [vmem:[#allocation8 + $0x10] sm:$0xff]  ;;  %v316_v30 = vsub.s32 6, %v627_v7  ;;  %v188_v35 = vsub.s32 1, %v627_v7 }
  0x41   :  { %387 = vmatpush3.msra.mxu0 %v91_v2  ;;  %397 = vmatprep.subr.mxu1 %v568_v0  ;;  %v204_v28 = vld [vmem:[#allocation8 + $0x8] sm:$0xff]  ;;  %v203_v29 = vld [vmem:[#allocation8] sm:$0xff]  ;;  %v193_v36 = vsub.s32 2, %v627_v7  ;;  %v288_v46 = vsub.s32 3, %v627_v7  ;;  %v306_v63 = vsub.s32 4, %v627_v7  ;;  %v332_v6 = vsub.s32 7, %v627_v7 }
  0x42   :  { %388 = vmatprep.subr.mxu0 %v568_v0  ;;  %v96_v10 = vrot.slane %v630_v9, %v95_v8  ;;  %398 = vmatpush3.msra.mxu1 %v210_v22  ;;  %v317_v31 = vrot.slane %v630_v9, %v316_v30  ;;  %v189_v37 = vrot.slane %v630_v9, %v188_v35  ;;  %s355_s17 = sshll.u32 %s572_s4, 4  ;;  %s356_s17 = int_to_ptr.vmem [resolvable:$true] %s355_s17 }
  0x43   :  { %389 = vmatpush3.msra.mxu0 %v90_v3  ;;  %399 = vmatprep.subr.mxu1 %v568_v0  ;;  %v194_v39 = vrot.slane %v630_v9, %v193_v36  ;;  %v289_v47 = vrot.slane %v630_v9, %v288_v46  ;;  %v307_v1 = vrot.slane %v630_v9, %v306_v63  ;;  %s533_s18 = scalar_lea.vmem %s356_s17, 32  ;;  %p538_p12 = scmp.lt.s32.totalorder %s356_s17, %s356_s17 }
  0x44   :  { %390 = vmatprep.subr.mxu0 %v568_v0  ;;  %400 = vmatpush3.msra.mxu1 %v209_v23  ;;  %p534_p11 = scmp.ne.s32.totalorder %s356_s17, %s533_s18  ;;  %p539_p13 = scmp.lt.s32.totalorder %s533_s18, %s533_s18 }
  0x45   :  { %391 = vmatpush3.msra.mxu0 %v89_v4  ;;  %401 = vmatprep.subr.mxu1 %v568_v0 }
  0x46   :  { %393 = vmatmul.mubr.msk.f32.vlgmr.msra.gmra.mxu0 %vm97_vm1, %v85_v5  ;;  %402 = vmatpush3.msra.mxu1 %v208_v24  ;;  %p540_p0 = por %p539_p13, %p538_p12 }
  0x47   :  { %403 = vmatprep.subr.mxu1 %v568_v0 }
  0x48   :  { %404 = vmatpush3.msra.mxu1 %v207_v25  ;;  %p541_p1 = pnand %p540_p0, %p534_p11 }
  0x49   :  { %405 = vmatprep.subr.mxu1 %v568_v0 }
  0x4a   :  { %406 = vmatpush3.msra.mxu1 %v206_v26 }
  0x4b   :  { %407 = vmatprep.subr.mxu1 %v568_v0 }
  0x4c   :  { %408 = vmatpush3.msra.mxu1 %v205_v27 }
  0x4d   :  { %409 = vmatprep.subr.mxu1 %v568_v0 }
  0x4e   :  { %410 = vmatpush3.msra.mxu1 %v204_v28 }
  0x4f   :  { %411 = vmatprep.subr.mxu1 %v568_v0  ;;  %v311_v0 = vsub.s32 5, %v627_v7 }
  0x50   :  { %412 = vmatpush3.msra.mxu1 %v203_v29 }
  0x51   :  { %v312_v4 = vrot.slane %v630_v9, %v311_v0 }
  0xb1   :  { %v199_v43 = vpop.permute.xlu1 %198 }
 0x106   :  { %v167_v11 = vpop.f32.mrf.mxu0 }
 0x107   :  { %v168_v12 = vadd.f32 %v167_v11, %v96_v10 }
 0x108   :  { %v394_v13 = vpop.f32.mrf.mxu0 }
 0x109   :  { %v172_v14 = vsel %vm171_vm2, %v168_v12, 0.0 }
 0x10a   :  { %173 = vadd.xlane.f32.xlu0 %v172_v14 }
 0x193   :  { %v174_v16 = vpop.xlane.xlu0 %173 }
 0x194   :  { %v176_v17 = vmul.f32 0.015625, %v174_v16  ;;  %v571_v16 = vmov 0  }
 0x195   :  { %428 = vset.pattern.permute.xlu0 %v571_v16 }
 0x196   :  { %v177_v18 = vsub.f32 %v168_v12, %v176_v17  ;;  %v333_v12 = vrot.slane %v630_v9, %v332_v6  ;;  %v368_v17 = vld [vmem:[#allocation10 + $0x8] ss:$0 sm:$0xff] }
 0x198   :  { %v178_v19 = vmul.f32 %v177_v18, %v177_v18 }
 0x19a   :  { %v179_v20 = vsel %vm171_vm2, %v178_v19, 0.0 }
 0x19b   :  { %180 = vadd.xlane.f32.xlu0 %v179_v20 }
 0x1b1   :  { %319 = vrot.lane.b32.xlu0 %v317_v31, %s570_s2 }
 0x224   :  { %v181_v32 = vpop.xlane.xlu0 %180 }
 0x225   :  { %v182_v33 = vmul.f32 0.015625, %v181_v32 }
 0x227   :  { %v183_v34 = vadd.f32 1e-05, %v182_v33 }
 0x228   :  { %v320_v52 = vpop.permute.xlu0 %319 }
 0x229   :  { %429 = vrsqrt.f32 %v183_v34 }
 0x236   :  { %v430_v38 = vpop.eup %429 }
 0x237   :  { %v185_v40 = vmul.f32 %v430_v38, %v177_v18 }
 0x239   :  { %v190_v41 = vmul.f32 %v189_v37, %v185_v40 }
 0x23b   :  { %v195_v42 = vadd.f32 %v194_v39, %v190_v41 }
 0x23d   :  { %v196_v44 = vmax.f32 %v195_v42, 0.0 }
 0x23f   :  { %v202_v45 = vsel %vm201_vm3, %v196_v44, %v199_v43 }
 0x240   :  { %414 = vmatmul.mubr.msk.f32.vlgmr.msra.gmra.mxu1 %vm212_vm4, %v202_v45 }
 0x300   :  { %v282_v48 = vpop.f32.mrf.mxu1 }
 0x301   :  { %v290_v49 = vadd.f32 %v289_v47, %v282_v48  ;;  %v322_v53 = vadd.f32 %v320_v52, %v282_v48 }
 0x302   :  { %v415_v50 = vpop.f32.mrf.mxu1 }
 0x303   :  { %v291_v51 = vsel %vm171_vm2, %v290_v49, 0.0  ;;  %v323_v54 = vmax.f32 %v322_v53, 0.0 }
 0x304   :  { %292 = vadd.xlane.f32.xlu1 %v291_v51 }
 0x315   :  { %325 = vrot.lane.b32.xlu1 %v323_v54, %s570_s2 }
 0x38d   :  { %v293_v55 = vpop.xlane.xlu1 %292 }
 0x38e   :  { %v294_v56 = vmul.f32 0.015625, %v293_v55 }
 0x390   :  { %v295_v57 = vsub.f32 %v290_v49, %v294_v56 }
 0x391   :  { %v326_v10 = vpop.permute.xlu1 %325 }
 0x392   :  { %v296_v58 = vmul.f32 %v295_v57, %v295_v57 }
 0x394   :  { %v297_v59 = vsel %vm171_vm2, %v296_v58, 0.0 }
 0x395   :  { %298 = vadd.xlane.f32.xlu0 %v297_v59 }
 0x41e   :  { %v299_v60 = vpop.xlane.xlu0 %298 }
 0x41f   :  { %v300_v61 = vmul.f32 0.015625, %v299_v60 }
 0x421   :  { %v301_v62 = vadd.f32 1e-05, %v300_v61 }
 0x423   :  { %431 = vrsqrt.f32 %v301_v62 }
 0x430   :  { %v432_v2 = vpop.eup %431 }
 0x431   :  { %v303_v3 = vmul.f32 %v432_v2, %v295_v57 }
 0x433   :  { %v308_v5 = vmul.f32 %v307_v1, %v303_v3 }
 0x435   :  { %v313_v8 = vadd.f32 %v312_v4, %v308_v5 }
 0x437   :  { %v328_v11 = vadd.f32 %v326_v10, %v313_v8 }
 0x439   :  { %v329_v13 = vmax.f32 %v328_v11, 0.0 }
 0x43b   :  { %v334_v14 = vmul.f32 %v333_v12, %v329_v13 }
 0x43d   :  { %v335_v15 = vsel %vm171_vm2, %v334_v14, 0.0 }
 0x43e   :  { %336 = vadd.xlane.f32.xlu1 %v335_v15 }
 0x4c7   :  { %v337_v18 = vpop.xlane.xlu1 %336 }
 0x4c8   :  { %v342_v19 = vadd.f32 %v368_v17, %v337_v18 }
 0x4ca   :  { %345 = vperm.xlu0 %428, %v342_v19  }
 0x545   :  { %v346_v7 = vpop.permute.xlu0 %345 }
 0x546   :  { %348 = vst [vmem:[#allocation11] sm:$0x3] %v346_v7 }
 0x547   :  { %544 = shalt.err (!%p541_p1)
}
 0x548   :  { %358 = dma.vmem_to_hbm [thread:$0]  %s356_s17, 32, %s663_s5, [#allocation4]  }
 0x549   :  { %559 = dma.done.wait [#allocation4], 32  }
 0x54a   :  { %560 = vsyncadd [#allocation4], 4294967264 }
 0x54b   :  { %362 = vsyncpa [#allocation3], 1 }
 0x54c   :  { %363 = vsyncpa [#allocation6], 1 }
 0x54d   :  { %364 = vsyncpa [#allocation9], 1 }
 0x54e   :  { %365 = vsyncpa [#allocation4], 1 }

</bundles_post_ra>
